<compile_context>
chip_gen: v6e
topology: v6e:2x2x1
jax: 0.10.0
libtpu: 0.0.40
codegen_flags: <defaults>
</compile_context>

<pallas_src>
import jax
import jax.numpy as jnp
from jax.experimental import pallas as pl
from jax.experimental.pallas import tpu as pltpu

_LANE = 128
_SUBLANE = 8


def _round_up(x, m):
    return (x + m - 1) // m * m


# --------------------------------------------------------------------------- #
# Kernel: fused 3-layer MLP on one batch tile.  Weights/biases are resident
# (constant index_map), the z tile and output tile are software-pipelined.
# --------------------------------------------------------------------------- #
def _mlp_kernel(x_ref, w1_ref, b1_ref, w2_ref, b2_ref, w3_ref, b3_ref, o_ref):
    # Layer 1: Linear + ReLU.  z arrives f32; cast to bf16 in VMEM for the MXU.
    x = x_ref[...].astype(jnp.bfloat16)
    h1 = jnp.dot(x, w1_ref[...], preferred_element_type=jnp.float32) + b1_ref[...]
    h1 = jnp.maximum(h1, 0.0).astype(jnp.bfloat16)

    # Layer 2: Linear + ReLU.
    h2 = jnp.dot(h1, w2_ref[...], preferred_element_type=jnp.float32) + b2_ref[...]
    h2 = jnp.maximum(h2, 0.0).astype(jnp.bfloat16)

    # Layer 3: Linear (logits), f32 epilogue, lane-narrow (out_dim) store.
    o_ref[...] = (
        jnp.dot(h2, w3_ref[...], preferred_element_type=jnp.float32) + b3_ref[...]
    )


# --------------------------------------------------------------------------- #
# One-time parameter preparation (padding + bf16 cast) — not per forward call.
# --------------------------------------------------------------------------- #
def prepare_mlp_params(params):
    """Pad hidden dims to full 128-lane vregs and cast matmul operands to bf16.

    Returns a tuple consumed by mlp_forward.  Weights are stored (fan_in, fan_out)
    so the kernel computes x @ W directly.
    """
    w1, b1, w2, b2, w3, b3 = params
    in_dim = w1.shape[0]
    h1, h2, out_dim = w1.shape[1], w2.shape[1], w3.shape[1]

    h1p = _round_up(h1, _LANE)
    h2p = _round_up(h2, _LANE)

    def pad2(a, rows, cols, dtype):
        return jnp.pad(a, ((0, rows - a.shape[0]), (0, cols - a.shape[1]))).astype(dtype)

    # bf16 MXU operands; f32 biases (f32 VPU epilogue on every generation).
    w1p = pad2(w1, in_dim, h1p, jnp.bfloat16)
    b1p = pad2(b1.reshape(1, -1), 1, h1p, jnp.float32)
    w2p = pad2(w2, h1p, h2p, jnp.bfloat16)
    b2p = pad2(b2.reshape(1, -1), 1, h2p, jnp.float32)
    # w3: pad rows only (contraction dim); keep the real out_dim on the lane axis.
    w3p = pad2(w3, h2p, out_dim, jnp.bfloat16)
    b3p = b3.reshape(1, -1).astype(jnp.float32)

    return (in_dim, h1p, h2p, out_dim, w1p, b1p, w2p, b2p, w3p, b3p)


def _pick_tile_b(B, *, target=1024, min_grid=4):
    """Batch tile: multiple of 8, <= target, aiming for >= min_grid grid steps."""
    tile = max(_SUBLANE, _round_up(pl.cdiv(B, min_grid), _SUBLANE))
    tile = min(tile, _round_up(min(B, target), _SUBLANE))
    return tile


def _vmem_limit_bytes(tile_b, in_dim, h1p, h2p, out_dim):
    est = (
        2 * tile_b * in_dim * 4                                  # z tile (f32) x2 bufs
        + 2 * tile_b * out_dim * 4                               # out tile (f32) x2 bufs
        + 2 * (in_dim * h1p + h1p * h2p + h2p * out_dim) * 2     # weights (bf16)
        + 2 * (h1p + h2p + out_dim) * 4                          # biases (f32)
        + tile_b * (h1p + h2p) * 6                               # h1/h2 intermediates
    )
    try:
        vmem_cap = int(pltpu.get_tpu_info().vmem_capacity_bytes)
    except Exception:
        vmem_cap = 64 * 1024 * 1024  # conservative (v7x per-TC physical VMEM)
    return int(min(max(2 * est, 8 * 1024 * 1024), int(0.6 * vmem_cap)))


def mlp_forward(z, prepared, *, tile_b=None):
    """Fused 3-layer MLP forward.  z: (B, in_dim) float32 -> (B, out_dim) float32."""
    in_dim, h1p, h2p, out_dim, w1p, b1p, w2p, b2p, w3p, b3p = prepared
    B, zd = z.shape
    assert zd == in_dim, "z feature dim must match the prepared weights"

    # TODO(synk): for very large in_dim the resident bf16 weights (~1.25*in_dim^2
    # bytes) exceed per-core VMEM (64 MiB on v7x); switch to streaming w1/w2 over
    # a K grid axis with a pl.when-initialized f32 accumulator in that regime.

    if tile_b is None:
        tile_b = _pick_tile_b(B)
    tile_b = max(_SUBLANE, _round_up(tile_b, _SUBLANE))

    # Pad the batch to a tile multiple instead of collapsing to grid=1.
    Bp = _round_up(B, tile_b)
    zp = z if Bp == B else jnp.pad(z, ((0, Bp - B), (0, 0)))
    grid = (Bp // tile_b,)

    # Grid-invariant weight/bias blocks (constant index_map -> fetched once).
    def full(shape):
        return pl.BlockSpec(shape, lambda i: (0,) * len(shape))

    flops = 2 * Bp * (in_dim * h1p + h1p * h2p + h2p * out_dim)
    bytes_accessed = (
        zp.size * 4
        + Bp * out_dim * 4
        + (w1p.size + w2p.size + w3p.size) * 2
        + (b1p.size + b2p.size + b3p.size) * 4
    )
    cost = pl.CostEstimate(flops=flops, transcendentals=0, bytes_accessed=bytes_accessed)

    out = pl.pallas_call(
        _mlp_kernel,
        out_shape=jax.ShapeDtypeStruct((Bp, out_dim), jnp.float32),
        grid_spec=pltpu.PrefetchScalarGridSpec(
            num_scalar_prefetch=0,
            grid=grid,
            in_specs=[
                pl.BlockSpec((tile_b, in_dim), lambda i: (i, 0)),  # pipelined z tile
                full((in_dim, h1p)),
                full((1, h1p)),
                full((h1p, h2p)),
                full((1, h2p)),
                full((h2p, out_dim)),
                full((1, out_dim)),
            ],
            out_specs=pl.BlockSpec((tile_b, out_dim), lambda i: (i, 0)),
        ),
        compiler_params=pltpu.CompilerParams(
            dimension_semantics=("parallel",),  # batch tiles shard across TCs (v7x)
            vmem_limit_bytes=_vmem_limit_bytes(tile_b, in_dim, h1p, h2p, out_dim),
        ),
        cost_estimate=cost,
    )(zp, w1p, b1p, w2p, b2p, w3p, b3p)

    return out if Bp == B else out[:B]


# --------------------------------------------------------------------------- #
# Reference / init helpers
# --------------------------------------------------------------------------- #
def init_mlp_params(key, in_dim, out_dim, dtype=jnp.float32):
    """Deterministic synthetic init (kaiming-normal-ish, like _weights_init)."""
    h1 = in_dim // 2
    h2 = in_dim // 4
    k1, k2, k3 = jax.random.split(key, 3)

    def kaiming(k, fan_in, fan_out):
        std = jnp.sqrt(2.0 / fan_in).astype(dtype)
        # Stored as (fan_in, fan_out) so the kernel computes x @ W directly.
        return jax.random.normal(k, (fan_in, fan_out), dtype) * std

    w1 = kaiming(k1, in_dim, h1)
    b1 = jnp.zeros((1, h1), dtype)
    w2 = kaiming(k2, h1, h2)
    b2 = jnp.zeros((1, h2), dtype)
    w3 = kaiming(k3, h2, out_dim)
    b3 = jnp.zeros((1, out_dim), dtype)
    return (w1, b1, w2, b2, w3, b3)


def mlp_reference(z, params):
    w1, b1, w2, b2, w3, b3 = params
    h = jnp.maximum(z @ w1 + b1, 0.0)
    h = jnp.maximum(h @ w2 + b2, 0.0)
    return h @ w3 + b3


if __name__ == "__main__":
    key = jax.random.PRNGKey(0)
    kx, kp = jax.random.split(key)

    # Small shapes consistent with the module; batch large enough that the
    # auto-picked tile_b (64) gives a 4-step grid (2 per TC under megacore).
    batch, in_dim, out_dim = 256, 32, 4
    z = jax.random.normal(kx, (batch, in_dim), jnp.float32)
    params = init_mlp_params(kp, in_dim, out_dim)

    prepared = prepare_mlp_params(params)  # one-time pad/cast, not per call
    out = jax.block_until_ready(mlp_forward(z, prepared))
    ref = mlp_reference(z, params)

    assert out.shape == (batch, out_dim)
    max_err = float(jnp.max(jnp.abs(out - ref)))
    # bf16 matmul operands with f32 accumulation -> loosened tolerance vs f32 ref.
    assert jnp.allclose(out, ref, atol=5e-2, rtol=5e-2), (
        f"mismatch vs reference (max abs err {max_err})"
    )

    print("KERNEL_OK")
</pallas_src>

<mosaic_0001>
module attributes {stable_mosaic.version = 11 : i64} {
  func.func @_mlp_kernel(%arg0: i32, %arg1: memref<64x32xf32, #tpu.memory_space<vmem>>, %arg2: memref<32x128xbf16, #tpu.memory_space<vmem>>, %arg3: memref<1x128xf32, #tpu.memory_space<vmem>>, %arg4: memref<128x128xbf16, #tpu.memory_space<vmem>>, %arg5: memref<1x128xf32, #tpu.memory_space<vmem>>, %arg6: memref<128x4xbf16, #tpu.memory_space<vmem>>, %arg7: memref<1x4xf32, #tpu.memory_space<vmem>>, %arg8: memref<64x4xf32, #tpu.memory_space<vmem>>) attributes {dimension_semantics = [#tpu.dimension_semantics<parallel>], iteration_bounds = array<i64: 4>, scalar_prefetch = 0 : i64, scratch_operands = 0 : i64, tpu.core_type = #tpu.core_type<tc>, window_params = [{transform_indices = @transform_0, window_bounds = array<i64: 64, 32>}, {pipeline_mode = #tpu.pipeline_mode<synchronous>, transform_indices = @transform_1, window_bounds = array<i64: 32, 128>}, {pipeline_mode = #tpu.pipeline_mode<synchronous>, transform_indices = @transform_2, window_bounds = array<i64: 1, 128>}, {pipeline_mode = #tpu.pipeline_mode<synchronous>, transform_indices = @transform_3, window_bounds = array<i64: 128, 128>}, {pipeline_mode = #tpu.pipeline_mode<synchronous>, transform_indices = @transform_4, window_bounds = array<i64: 1, 128>}, {pipeline_mode = #tpu.pipeline_mode<synchronous>, transform_indices = @transform_5, window_bounds = array<i64: 128, 4>}, {pipeline_mode = #tpu.pipeline_mode<synchronous>, transform_indices = @transform_6, window_bounds = array<i64: 1, 4>}, {transform_indices = @transform_7, window_bounds = array<i64: 64, 4>}]} {
    %c0 = arith.constant 0 : index
    %c0_0 = arith.constant 0 : index
    %0 = vector.load %arg1[%c0, %c0_0] : memref<64x32xf32, #tpu.memory_space<vmem>>, vector<64x32xf32>
    %1 = arith.truncf %0 : vector<64x32xf32> to vector<64x32xbf16>
    %c0_1 = arith.constant 0 : index
    %c0_2 = arith.constant 0 : index
    %2 = vector.load %arg2[%c0_1, %c0_2] : memref<32x128xbf16, #tpu.memory_space<vmem>>, vector<32x128xbf16>
    %cst = arith.constant dense<0.000000e+00> : vector<64x128xf32>
    %3 = tpu.matmul %1, %2, %cst {dimension_numbers = #tpu.dot_dimension_numbers<[1], [0], [0], [1], [0, 0, 1, 1], [], []>} : vector<64x32xbf16>, vector<32x128xbf16>, vector<64x128xf32> -> vector<64x128xf32>
    %c0_3 = arith.constant 0 : index
    %c0_4 = arith.constant 0 : index
    %4 = vector.load %arg3[%c0_3, %c0_4] : memref<1x128xf32, #tpu.memory_space<vmem>>, vector<1x128xf32>
    %5 = vector.broadcast %4 : vector<1x128xf32> to vector<64x128xf32>
    %6 = arith.addf %3, %5 : vector<64x128xf32>
    %cst_5 = arith.constant 0.000000e+00 : f32
    %7 = vector.broadcast %cst_5 : f32 to vector<64x128xf32>
    %8 = arith.maximumf %6, %7 : vector<64x128xf32>
    %9 = arith.truncf %8 : vector<64x128xf32> to vector<64x128xbf16>
    %c0_6 = arith.constant 0 : index
    %c0_7 = arith.constant 0 : index
    %10 = vector.load %arg4[%c0_6, %c0_7] : memref<128x128xbf16, #tpu.memory_space<vmem>>, vector<128x128xbf16>
    %cst_8 = arith.constant dense<0.000000e+00> : vector<64x128xf32>
    %11 = tpu.matmul %9, %10, %cst_8 {dimension_numbers = #tpu.dot_dimension_numbers<[1], [0], [0], [1], [0, 0, 1, 1], [], []>} : vector<64x128xbf16>, vector<128x128xbf16>, vector<64x128xf32> -> vector<64x128xf32>
    %c0_9 = arith.constant 0 : index
    %c0_10 = arith.constant 0 : index
    %12 = vector.load %arg5[%c0_9, %c0_10] : memref<1x128xf32, #tpu.memory_space<vmem>>, vector<1x128xf32>
    %13 = vector.broadcast %12 : vector<1x128xf32> to vector<64x128xf32>
    %14 = arith.addf %11, %13 : vector<64x128xf32>
    %cst_11 = arith.constant 0.000000e+00 : f32
    %15 = vector.broadcast %cst_11 : f32 to vector<64x128xf32>
    %16 = arith.maximumf %14, %15 : vector<64x128xf32>
    %17 = arith.truncf %16 : vector<64x128xf32> to vector<64x128xbf16>
    %c0_12 = arith.constant 0 : index
    %c0_13 = arith.constant 0 : index
    %18 = vector.load %arg6[%c0_12, %c0_13] : memref<128x4xbf16, #tpu.memory_space<vmem>>, vector<128x4xbf16>
    %cst_14 = arith.constant dense<0.000000e+00> : vector<64x4xf32>
    %19 = tpu.matmul %17, %18, %cst_14 {dimension_numbers = #tpu.dot_dimension_numbers<[1], [0], [0], [1], [0, 0, 1, 1], [], []>} : vector<64x128xbf16>, vector<128x4xbf16>, vector<64x4xf32> -> vector<64x4xf32>
    %c0_15 = arith.constant 0 : index
    %c0_16 = arith.constant 0 : index
    %20 = vector.load %arg7[%c0_15, %c0_16] : memref<1x4xf32, #tpu.memory_space<vmem>>, vector<1x4xf32>
    %21 = vector.broadcast %20 : vector<1x4xf32> to vector<64x4xf32>
    %22 = arith.addf %19, %21 : vector<64x4xf32>
    %c0_17 = arith.constant 0 : index
    %c0_18 = arith.constant 0 : index
    %23 = vector.load %arg8[%c0_17, %c0_18] : memref<64x4xf32, #tpu.memory_space<vmem>>, vector<64x4xf32>
    tpu.vector_store %arg8[%c0_17, %c0_18], %22 {strides = array<i32>} : memref<64x4xf32, #tpu.memory_space<vmem>>, vector<64x4xf32>,
    return
  }
  func.func @transform_0(%arg0: i32) -> (i32, i32) {
    %c0_i32 = arith.constant 0 : i32
    %c0_i32_0 = arith.constant 0 : i32
    return %arg0, %c0_i32 : i32, i32
  }
  func.func @transform_1(%arg0: i32) -> (i32, i32) {
    %c0_i32 = arith.constant 0 : i32
    %c0_i32_0 = arith.constant 0 : i32
    %c0_i32_1 = arith.constant 0 : i32
    return %c0_i32, %c0_i32_0 : i32, i32
  }
  func.func @transform_2(%arg0: i32) -> (i32, i32) {
    %c0_i32 = arith.constant 0 : i32
    %c0_i32_0 = arith.constant 0 : i32
    %c0_i32_1 = arith.constant 0 : i32
    return %c0_i32, %c0_i32_0 : i32, i32
  }
  func.func @transform_3(%arg0: i32) -> (i32, i32) {
    %c0_i32 = arith.constant 0 : i32
    %c0_i32_0 = arith.constant 0 : i32
    %c0_i32_1 = arith.constant 0 : i32
    return %c0_i32, %c0_i32_0 : i32, i32
  }
  func.func @transform_4(%arg0: i32) -> (i32, i32) {
    %c0_i32 = arith.constant 0 : i32
    %c0_i32_0 = arith.constant 0 : i32
    %c0_i32_1 = arith.constant 0 : i32
    return %c0_i32, %c0_i32_0 : i32, i32
  }
  func.func @transform_5(%arg0: i32) -> (i32, i32) {
    %c0_i32 = arith.constant 0 : i32
    %c0_i32_0 = arith.constant 0 : i32
    %c0_i32_1 = arith.constant 0 : i32
    return %c0_i32, %c0_i32_0 : i32, i32
  }
  func.func @transform_6(%arg0: i32) -> (i32, i32) {
    %c0_i32 = arith.constant 0 : i32
    %c0_i32_0 = arith.constant 0 : i32
    %c0_i32_1 = arith.constant 0 : i32
    return %c0_i32, %c0_i32_0 : i32, i32
  }
  func.func @transform_7(%arg0: i32) -> (i32, i32) {
    %c0_i32 = arith.constant 0 : i32
    %c0_i32_0 = arith.constant 0 : i32
    return %arg0, %c0_i32 : i32, i32
  }
}

</mosaic_0001>

<bundles_post_ra>
// kernel: tpu_custom_call.1
= control target key start
LH: loop header
LB: loop body
LE: loop exit
PB: predicated region body
PF: predicated region fallthrough
CT: control target
= control target key end

     0   :  { %s957_s24 = smov 0   ;;  %s1056_s0 = inlined_call_operand.vmem [shape: f32[256,32], index: 0, kind: input, shape index: {}]   ;;  %s1057_s1 = inlined_call_operand.vmem [shape: bf16[32,128], index: 1, kind: input, shape index: {}]   ;;  %s1058_s2 = inlined_call_operand.vmem [shape: f32[1,128], index: 2, kind: input, shape index: {}]   ;;  %s1059_s3 = inlined_call_operand.vmem [shape: bf16[128,128], index: 3, kind: input, shape index: {}]   ;;  %s1060_s4 = inlined_call_operand.vmem [shape: f32[1,128], index: 4, kind: input, shape index: {}]   ;;  %s1061_s5 = inlined_call_operand.vmem [shape: bf16[128,4], index: 5, kind: input, shape index: {}]   ;;  %s1062_s6 = inlined_call_operand.vmem [shape: f32[1,4], index: 6, kind: input, shape index: {}]   ;;  %s1063_s7 = inlined_call_operand.vmem [shape: f32[256,4], index: 7, kind: output, shape index: {}]  }
   0x1 LB: > { %s757_s25 = sadd.s32 4294967295, %s915_s24   ;;  %p761_p0 = scmp.ge.s32.totalorder %s915_s24, 1  ;;  %s915_s24 = sphi %s957_s24, %s17_s24  }
   0x2   : > { %p238_p1 = scmp.lt.s32.totalorder %s915_s24, 5 }
   0x4   : > { %p239_p2 = pnand %p761_p0, %p238_p1 }
   0x5   : > { %s762_s28 = sshll.u32 (!%p239_p2), %s757_s25, 3 }
   0x6   : > { %242 = sbr.rel (%p239_p2) target bundleno = 642 (0x282), region = 48  ;;  %p271_p3 = scmp.lt.s32.totalorder (!%p239_p2), %s762_s28, 31 }
   0xb   : > { %v891_v0 = vld [vmem:[%s1057_s1 + $0x8] sm:$0xff]   ;;  %v892_v1 = vld [vmem:[%s1057_s1] sm:$0xff]   ;;  %v893_v2 = vld [vmem:[%s1059_s3 + $0x38] sm:$0xff]   ;;  %s1065_s28 = smov (!%p271_p3, %s762_s28), 31  ;;  %vm318_vm0 = vcmask 261120   ;;  %vm692_vm1 = vcmask 31744  }
   0xc   : > { %823 = vmatprep.subr.bf16.mxu0 %v891_v0  ;;  %v894_v3 = vld [vmem:[%s1059_s3 + $0x30] sm:$0xff]   ;;  %835 = vmatprep.subr.bf16.mxu1 %v893_v2  ;;  %s763_s12 = sshll.u32 %s1065_s28, 3  ;;  %v895_v4 = vld [vmem:[%s1059_s3 + $0x28] sm:$0xff]   ;;  %v896_v14 = vld [vmem:[%s1059_s3 + $0x20] sm:$0xff]  }
   0xd   : > { %824 = vmatpush3.bf16.msra.mxu0 %v891_v0  ;;  %836 = vmatpush3.bf16.msra.mxu1 %v893_v2  ;;  %s274_s15 = scalar_lea.vmem %s1056_s0, %s763_s12  ;;  %v897_v17 = vld [vmem:[%s1059_s3 + $0x18] sm:$0xff]   ;;  %v898_v19 = vld [vmem:[%s1059_s3 + $0x10] sm:$0xff]   ;;  %v899_v20 = vld [vmem:[%s1059_s3 + $0x8] sm:$0xff]   ;;  %s280_s11 = scalar_lea.vmem %s1063_s7, %s763_s12 }
   0xe   : > { %825 = vmatprep.subr.bf16.mxu0 %v892_v1  ;;  %837 = vmatprep.subr.bf16.mxu1 %v894_v3  ;;  %v283_v5 = vld [vmem:[%s274_s15] sm:$0xff]  ;;  %v284_v6 = vld [vmem:[%s274_s15 + $0x8] sm:$0xff]  ;;  %v285_v7 = vld [vmem:[%s274_s15 + $0x10] sm:$0xff] }
   0xf   : > { %v291_v8 = vpack.c.bf16 %v284_v6, %v283_v5  ;;  %v286_v9 = vld [vmem:[%s274_s15 + $0x18] sm:$0xff]  ;;  %v287_v10 = vld [vmem:[%s274_s15 + $0x20] sm:$0xff]  ;;  %v288_v11 = vld [vmem:[%s274_s15 + $0x28] sm:$0xff] }
  0x10   : > { %v292_v12 = vpack.c.bf16 %v286_v9, %v285_v7  ;;  %v293_v13 = vpack.c.bf16 %v288_v11, %v287_v10  ;;  %v289_v15 = vld [vmem:[%s274_s15 + $0x30] sm:$0xff]  ;;  %v290_v16 = vld [vmem:[%s274_s15 + $0x38] sm:$0xff]  ;;  %v900_v21 = vld [vmem:[%s1059_s3] sm:$0xff]  }
  0x11   : > { %826 = vmatpush3.bf16.msra.mxu0 %v892_v1  ;;  %838 = vmatpush3.bf16.msra.mxu1 %v894_v3  ;;  %v294_v18 = vpack.c.bf16 %v290_v16, %v289_v15  ;;  %v901_v22 = vld [vmem:[%s1061_s5 + $0x38] sm:$0xff]   ;;  %v902_v23 = vld [vmem:[%s1061_s5 + $0x30] sm:$0xff]   ;;  %v903_v24 = vld [vmem:[%s1061_s5 + $0x28] sm:$0xff]  }
  0x12   : > { %827 = vmatprep.mubr.msk.bf16.mxu0 %vm318_vm0, %v291_v8  ;;  %839 = vmatprep.subr.bf16.mxu1 %v895_v4  ;;  %v904_v25 = vld [vmem:[%s1061_s5 + $0x20] sm:$0xff]   ;;  %v905_v26 = vld [vmem:[%s1061_s5 + $0x18] sm:$0xff]   ;;  %v906_v56 = vld [vmem:[%s1061_s5 + $0x10] sm:$0xff]  }
  0x13   : > { %859 = vmatprep.subr.bf16.mxu0 %v901_v22  ;;  %v766_v29 = vld [vmem:[%s1058_s2] ss:$0 sm:$0xff]  ;;  %v907_v57 = vld [vmem:[%s1061_s5 + $0x8] sm:$0xff]  }
  0x14   : > { %828 = vmatmul.mubr.msk.bf16.vlgmr.msra.gmra.mxu0 %vm318_vm0, %v292_v12  ;;  %v908_v58 = vld [vmem:[%s1061_s5] sm:$0xff]  }
  0x15   : > { %831 = vmatprep.mubr.msk.bf16.mxu0 %vm318_vm0, %v293_v13  ;;  %840 = vmatpush3.bf16.msra.mxu1 %v895_v4  ;;  %v773_v61 = vld [vmem:[%s1060_s4] ss:$0 sm:$0xff] }
  0x16   : > { %841 = vmatprep.subr.bf16.mxu1 %v896_v14  ;;  %860 = vmatpush3.bf16.msra.mxu0 %v901_v22 }
  0x17   : > { %861 = vmatprep.subr.bf16.mxu0 %v902_v23 }
  0x19   : > { %842 = vmatpush3.bf16.msra.mxu1 %v896_v14 }
  0x1a   : > { %843 = vmatprep.subr.bf16.mxu1 %v897_v17  ;;  %862 = vmatpush3.bf16.msra.mxu0 %v902_v23 }
  0x1b   : > { %863 = vmatprep.subr.bf16.mxu0 %v903_v24 }
  0x1c   : > { %832 = vmatmul.mubr.msk.bf16.gmra.mxu0 %vm318_vm0, %v294_v18 }
  0x1d   : > { %844 = vmatpush3.bf16.msra.mxu1 %v897_v17 }
  0x1e   : > { %845 = vmatprep.subr.bf16.mxu1 %v898_v19  ;;  %864 = vmatpush3.bf16.msra.mxu0 %v903_v24  ;;  %v782_v24 = vld [vmem:[%s1062_s6] ss:$0 sm:$0xff] }
  0x1f   : > { %865 = vmatprep.subr.bf16.mxu0 %v904_v25 }
  0x21   : > { %846 = vmatpush3.bf16.msra.mxu1 %v898_v19 }
  0x22   : > { %847 = vmatprep.subr.bf16.mxu1 %v899_v20  ;;  %866 = vmatpush3.bf16.msra.mxu0 %v904_v25 }
  0x23   : > { %867 = vmatprep.subr.bf16.mxu0 %v905_v26 }
  0x25   : > { %848 = vmatpush3.bf16.msra.mxu1 %v899_v20 }
  0x26   : > { %849 = vmatprep.subr.bf16.mxu1 %v900_v21  ;;  %868 = vmatpush3.bf16.msra.mxu0 %v905_v26 }
  0x27   : > { %869 = vmatprep.subr.bf16.mxu0 %v906_v56 }
  0x29   : > { %850 = vmatpush3.bf16.msra.mxu1 %v900_v21 }
  0x2a   : > { %870 = vmatpush3.bf16.msra.mxu0 %v906_v56 }
  0x2b   : > { %871 = vmatprep.subr.bf16.mxu0 %v907_v57 }
  0x2e   : > { %872 = vmatpush3.bf16.msra.mxu0 %v907_v57 }
  0x2f   : > { %873 = vmatprep.subr.bf16.mxu0 %v908_v58 }
  0x32   : > { %874 = vmatpush3.bf16.msra.mxu0 %v908_v58 }
  0xd4   : > { %v829_v27 = vpop.f32.mrf.mxu0 }
  0xd5   : > { %v374_v33 = vadd.f32 %v829_v27, %v766_v29 }
  0xd6   : > { %v365_v28 = vpop.f32.mrf.mxu0 }
  0xd7   : > { %v366_v31 = vadd.f32 %v766_v29, %v365_v28  ;;  %v398_v40 = vmax.f32 %v374_v33, 0.0 }
  0xd8   : > { %v830_v30 = vpop.f32.mrf.mxu0 }
  0xd9   : > { %v377_v32 = vadd.f32 %v830_v30, %v766_v29  ;;  %v396_v38 = vmax.f32 %v366_v31, 0.0 }
  0xda   : > { %v368_v34 = vpop.f32.mrf.mxu0 }
  0xdb   : > { %v369_v35 = vadd.f32 %v766_v29, %v368_v34  ;;  %v399_v36 = vmax.f32 %v377_v32, 0.0 }
  0xdc   : > { %v833_v37 = vpop.f32.mrf.mxu0 }
  0xdd   : > { %v397_v39 = vmax.f32 %v369_v35, 0.0  ;;  %v405_v43 = vpack.c.bf16 %v399_v36, %v398_v40  ;;  %v390_v47 = vadd.f32 %v833_v37, %v766_v29 }
  0xde   : > { %v381_v41 = vpop.f32.mrf.mxu0 }
  0xdf   : > { %v404_v42 = vpack.c.bf16 %v397_v39, %v396_v38  ;;  %v382_v45 = vadd.f32 %v766_v29, %v381_v41  ;;  %v402_v53 = vmax.f32 %v390_v47, 0.0 }
  0xe0   : > { %v834_v44 = vpop.f32.mrf.mxu0 }
  0xe1   : > { %v393_v46 = vadd.f32 %v834_v44, %v766_v29  ;;  %851 = vmatprep.mubr.bf16.mxu1 %v404_v42  ;;  %v400_v51 = vmax.f32 %v382_v45, 0.0 }
  0xe2   : > { %v384_v48 = vpop.f32.mrf.mxu0  ;;  %852 = vmatmul.mubr.bf16.vlgmr.msra.gmra.mxu1 %v405_v43 }
  0xe3   : > { %v385_v49 = vadd.f32 %v766_v29, %v384_v48  ;;  %v403_v50 = vmax.f32 %v393_v46, 0.0 }
  0xe5   : > { %v401_v52 = vmax.f32 %v385_v49, 0.0  ;;  %v407_v55 = vpack.c.bf16 %v403_v50, %v402_v53 }
  0xe7   : > { %v406_v54 = vpack.c.bf16 %v401_v52, %v400_v51 }
  0xe9   : > { %855 = vmatprep.mubr.bf16.mxu1 %v406_v54 }
  0xea   : > { %856 = vmatmul.mubr.bf16.gmra.mxu1 %v407_v55 }
 0x1a2   : > { %v853_v59 = vpop.f32.mrf.mxu1 }
 0x1a3   : > { %v522_v1 = vadd.f32 %v853_v59, %v773_v61 }
 0x1a4   : > { %v513_v60 = vpop.f32.mrf.mxu1 }
 0x1a5   : > { %v514_v63 = vadd.f32 %v773_v61, %v513_v60  ;;  %v546_v8 = vmax.f32 %v522_v1, 0.0 }
 0x1a6   : > { %v854_v62 = vpop.f32.mrf.mxu1 }
 0x1a7   : > { %v525_v0 = vadd.f32 %v854_v62, %v773_v61  ;;  %v544_v6 = vmax.f32 %v514_v63, 0.0 }
 0x1a8   : > { %v516_v2 = vpop.f32.mrf.mxu1 }
 0x1a9   : > { %v517_v3 = vadd.f32 %v773_v61, %v516_v2  ;;  %v547_v4 = vmax.f32 %v525_v0, 0.0 }
 0x1aa   : > { %v857_v5 = vpop.f32.mrf.mxu1 }
 0x1ab   : > { %v545_v7 = vmax.f32 %v517_v3, 0.0  ;;  %v553_v11 = vpack.c.bf16 %v547_v4, %v546_v8  ;;  %v538_v15 = vadd.f32 %v857_v5, %v773_v61 }
 0x1ac   : > { %v529_v9 = vpop.f32.mrf.mxu1 }
 0x1ad   : > { %v552_v10 = vpack.c.bf16 %v545_v7, %v544_v6  ;;  %v530_v13 = vadd.f32 %v773_v61, %v529_v9  ;;  %v550_v21 = vmax.f32 %v538_v15, 0.0 }
 0x1ae   : > { %v858_v12 = vpop.f32.mrf.mxu1 }
 0x1af   : > { %v541_v14 = vadd.f32 %v858_v12, %v773_v61  ;;  %875 = vmatprep.mubr.bf16.mxu0 %v552_v10  ;;  %v548_v19 = vmax.f32 %v530_v13, 0.0 }
 0x1b0   : > { %v532_v16 = vpop.f32.mrf.mxu1  ;;  %876 = vmatmul.mubr.bf16.vlgmr.msra.gmra.mxu0 %v553_v11 }
 0x1b1   : > { %v533_v17 = vadd.f32 %v773_v61, %v532_v16  ;;  %v551_v18 = vmax.f32 %v541_v14, 0.0 }
 0x1b3   : > { %v549_v20 = vmax.f32 %v533_v17, 0.0  ;;  %v555_v23 = vpack.c.bf16 %v551_v18, %v550_v21 }
 0x1b5   : > { %v554_v22 = vpack.c.bf16 %v549_v20, %v548_v19 }
 0x1b7   : > { %879 = vmatprep.mubr.bf16.mxu0 %v554_v22 }
 0x1b8   : > { %880 = vmatmul.mubr.bf16.gmra.mxu0 %v555_v23 }
 0x270   : > { %v877_v25 = vpop.f32.mrf.mxu0 }
 0x271   : > { %v670_v26 = vadd.f32 %v877_v25, %v782_v24 }
 0x272   : > { %v661_v27 = vpop.f32.mrf.mxu0 }
 0x273   : > { %695 = vst.msk [vmem:[%s280_s11 + $0x10] sm:$0xff] %vm692_vm1, %v670_v26  ;;  %v662_v28 = vadd.f32 %v782_v24, %v661_v27 }
 0x274   : > { %v878_v29 = vpop.f32.mrf.mxu0 }
 0x275   : > { %693 = vst.msk [vmem:[%s280_s11] sm:$0xff] %vm692_vm1, %v662_v28  ;;  %v673_v30 = vadd.f32 %v878_v29, %v782_v24 }
 0x276   : > { %v664_v31 = vpop.f32.mrf.mxu0 }
 0x277   : > { %696 = vst.msk [vmem:[%s280_s11 + $0x18] sm:$0xff] %vm692_vm1, %v673_v30  ;;  %v665_v32 = vadd.f32 %v782_v24, %v664_v31 }
 0x278   : > { %v881_v33 = vpop.f32.mrf.mxu0 }
 0x279   : > { %694 = vst.msk [vmem:[%s280_s11 + $0x8] sm:$0xff] %vm692_vm1, %v665_v32  ;;  %v686_v34 = vadd.f32 %v881_v33, %v782_v24 }
 0x27a   : > { %v677_v35 = vpop.f32.mrf.mxu0 }
 0x27b   : > { %699 = vst.msk [vmem:[%s280_s11 + $0x30] sm:$0xff] %vm692_vm1, %v686_v34  ;;  %v678_v36 = vadd.f32 %v782_v24, %v677_v35 }
 0x27c   : > { %v882_v37 = vpop.f32.mrf.mxu0 }
 0x27d   : > { %697 = vst.msk [vmem:[%s280_s11 + $0x20] sm:$0xff] %vm692_vm1, %v678_v36  ;;  %v689_v38 = vadd.f32 %v882_v37, %v782_v24 }
 0x27e   : > { %v680_v39 = vpop.f32.mrf.mxu0 }
 0x27f   : > { %700 = vst.msk [vmem:[%s280_s11 + $0x38] sm:$0xff] %vm692_vm1, %v689_v38  ;;  %v681_v40 = vadd.f32 %v782_v24, %v680_v39 }
 0x281   : > { %698 = vst.msk [vmem:[%s280_s11 + $0x28] sm:$0xff] %vm692_vm1, %v681_v40 }
 0x282 PF: > { %s17_s24 = sadd.s32 1, %s915_s24  }
 0x283   : > { %p14_p4 = scmp.ge.s32.totalorder %s17_s24, 6  }
 0x285   :  { %16 = sbr.rel (!%p14_p4) target bundleno = 1 (0x1), region = 78 }

</bundles_post_ra>
